<compile_context>
chip_gen: v6e
topology: v6e:2x2x1
jax: 0.10.0
libtpu: 0.0.40
codegen_flags: <defaults>
</compile_context>

<pallas_src>
import functools

import jax
import jax.numpy as jnp
from jax.experimental import pallas as pl
from jax.experimental.pallas import tpu as pltpu

F32 = jnp.float32
BF16 = jnp.bfloat16
LN_EPS = 1e-12                       # BERT LayerNorm eps
_VMEM_LIMIT = 48 * 1024 * 1024       # for kernels holding full (K,N) weights


def _tile(dim, target, gran):
    """Largest divisor of `dim` that is a multiple of `gran` and <= `target`.
    Falls back to the full dimension (always a legal block) if none exists."""
    if dim <= target:
        return dim
    c = (target // gran) * gran
    while c >= gran:
        if dim % c == 0:
            return c
        c -= gran
    # TODO(synk): pad/mask edge blocks instead of whole-dim residency for
    # dims with no granularity-aligned divisor (rare for BERT shapes).
    return dim


def _erf(x):
    # Abramowitz & Stegun 7.1.26 polynomial (|err| < 1.5e-7); only exp / abs /
    # where / arithmetic so it fuses into the matmul epilogue under Mosaic.
    a1, a2, a3, a4, a5 = (0.254829592, -0.284496736, 1.421413741,
                          -1.453152027, 1.061405429)
    p = 0.3275911
    ax = jnp.abs(x)
    t = 1.0 / (1.0 + p * ax)
    poly = ((((a5 * t + a4) * t + a3) * t + a2) * t + a1) * t
    y = 1.0 - poly * jnp.exp(-ax * ax)
    return jnp.where(x >= 0, y, -y)


def _gelu_exact(x):
    return 0.5 * x * (1.0 + _erf(x * 0.7071067811865476))


# ----------------------------------------------------------------------------
# Linear kernels
# ----------------------------------------------------------------------------

def _linear_kernel(x_ref, w_ref, b_ref, o_ref, *, activation):
    x = x_ref[...].astype(BF16)                       # bf16 MXU operands
    acc = jnp.dot(x, w_ref[...], preferred_element_type=F32) + b_ref[...]
    if activation == "gelu":
        acc = _gelu_exact(acc)                        # fused bias + GELU epilogue
    o_ref[...] = acc.astype(o_ref.dtype)


def linear_pallas(x, w, b, activation=None, out_dtype=BF16, tm=512, tn=512):
    """Tiled (M,K)@(K,N)+b, optional fused GELU, selectable output dtype."""
    M, K = x.shape
    N = w.shape[1]
    bm = _tile(M, tm, 8)
    bn = _tile(N, tn, 128)
    kern = functools.partial(_linear_kernel, activation=activation)
    return pl.pallas_call(
        kern,
        out_shape=jax.ShapeDtypeStruct((M, N), out_dtype),
        grid=(M // bm, N // bn),                       # j (weight axis) innermost
        in_specs=[
            pl.BlockSpec((bm, K), lambda i, j: (i, 0)),
            pl.BlockSpec((K, bn), lambda i, j: (0, j)),
            pl.BlockSpec((1, bn), lambda i, j: (0, j)),
        ],
        out_specs=pl.BlockSpec((bm, bn), lambda i, j: (i, j)),
        compiler_params=pltpu.CompilerParams(
            dimension_semantics=("parallel", "parallel")),
    )(x, w, b.reshape(1, N))


def _linear_res_ln_kernel(x_ref, w_ref, b_ref, r_ref, g_ref, bb_ref, o_ref):
    x = x_ref[...].astype(BF16)
    h = (jnp.dot(x, w_ref[...], preferred_element_type=F32)
         + b_ref[...] + r_ref[...].astype(F32))       # linear + residual (f32)
    mu = jnp.mean(h, axis=-1, keepdims=True)
    var = jnp.mean(jnp.square(h - mu), axis=-1, keepdims=True)
    y = (h - mu) * jax.lax.rsqrt(var + LN_EPS) * g_ref[...] + bb_ref[...]
    o_ref[...] = y.astype(o_ref.dtype)


def linear_residual_ln_pallas(x, w, b, resid, gamma, beta, out_dtype=BF16, tm=512):
    """LayerNorm(x @ w + b + resid); row-tiled, full (K,N) weight resident."""
    M, K = x.shape
    N = w.shape[1]
    bm = _tile(M, tm, 8)
    return pl.pallas_call(
        _linear_res_ln_kernel,
        out_shape=jax.ShapeDtypeStruct((M, N), out_dtype),
        grid=(M // bm,),
        in_specs=[
            pl.BlockSpec((bm, K), lambda i: (i, 0)),
            pl.BlockSpec((K, N), lambda i: (0, 0)),
            pl.BlockSpec((1, N), lambda i: (0, 0)),
            pl.BlockSpec((bm, N), lambda i: (i, 0)),
            pl.BlockSpec((1, N), lambda i: (0, 0)),
            pl.BlockSpec((1, N), lambda i: (0, 0)),
        ],
        out_specs=pl.BlockSpec((bm, N), lambda i: (i, 0)),
        compiler_params=pltpu.CompilerParams(
            dimension_semantics=("parallel",),
            vmem_limit_bytes=_VMEM_LIMIT),
    )(x, w, b.reshape(1, N), resid, gamma.reshape(1, N), beta.reshape(1, N))


# ----------------------------------------------------------------------------
# Embeddings + LayerNorm (position table NOT broadcast in HBM)
# ----------------------------------------------------------------------------

def _emb_ln_kernel(we_ref, te_ref, pe_ref, g_ref, b_ref, o_ref):
    h = we_ref[0] + te_ref[0] + pe_ref[...]            # (S,E); pe reused per batch
    mu = jnp.mean(h, axis=-1, keepdims=True)
    var = jnp.mean(jnp.square(h - mu), axis=-1, keepdims=True)
    o_ref[0] = (h - mu) * jax.lax.rsqrt(var + LN_EPS) * g_ref[...] + b_ref[...]


def emb_layernorm_pallas(we, te, pe, gamma, beta):
    """we/te: (B,S,E) gathered embeddings; pe: (S,E) position table."""
    B, S, E = we.shape
    return pl.pallas_call(
        _emb_ln_kernel,
        out_shape=jax.ShapeDtypeStruct((B, S, E), F32),
        grid=(B,),
        in_specs=[pl.BlockSpec((1, S, E), lambda b: (b, 0, 0)),
                  pl.BlockSpec((1, S, E), lambda b: (b, 0, 0)),
                  pl.BlockSpec((S, E), lambda b: (0, 0)),
                  pl.BlockSpec((1, E), lambda b: (0, 0)),
                  pl.BlockSpec((1, E), lambda b: (0, 0))],
        out_specs=pl.BlockSpec((1, S, E), lambda b: (b, 0, 0)),
        compiler_params=pltpu.CompilerParams(dimension_semantics=("parallel",)),
    )(we, te, pe, gamma.reshape(1, E), beta.reshape(1, E))


# ----------------------------------------------------------------------------
# BiGRU detector: streamed recurrence (grid over time) + fused head/soft-mask
# ----------------------------------------------------------------------------

def _bigru_step_kernel(gf_ref, gb_ref, whf_ref, bhf_ref, whb_ref, bhb_ref,
                       wlf_ref, wlb_ref, lf_ref, lb_ref, hf_sc, hb_sc, *, H):
    # gf_ref: fwd gates at time t (1,B,3H); gb_ref: bwd gates at time S-1-t.
    @pl.when(pl.program_id(0) == 0)
    def _():
        hf_sc[...] = jnp.zeros_like(hf_sc)
        hb_sc[...] = jnp.zeros_like(hb_sc)

    def gru_step(gi, h_prev, wh, bh):
        gh = jnp.dot(h_prev, wh, preferred_element_type=F32) + bh   # (B,3H)
        r = jax.nn.sigmoid(gi[:, 0:H] + gh[:, 0:H])
        z = jax.nn.sigmoid(gi[:, H:2 * H] + gh[:, H:2 * H])
        n = jnp.tanh(gi[:, 2 * H:3 * H] + r * gh[:, 2 * H:3 * H])
        return (1.0 - z) * n + z * h_prev

    # Interleave the two independent chains (fwd step t, bwd step S-1-t) so the
    # serial MXU latency of one chain hides behind the other.
    # TODO(synk): on v7x the two directions could run on separate TensorCores.
    hf = gru_step(gf_ref[0], hf_sc[...], whf_ref[...], bhf_ref[...])
    hb = gru_step(gb_ref[0], hb_sc[...], whb_ref[...], bhb_ref[...])
    hf_sc[...] = hf
    hb_sc[...] = hb
    # Per-step detection logit contribution (avoids storing (S,B,H) histories).
    lf_ref[0] = jnp.dot(hf, wlf_ref[...], preferred_element_type=F32)
    lb_ref[0] = jnp.dot(hb, wlb_ref[...], preferred_element_type=F32)


def bigru_recurrence_pallas(gates_f, gates_b, gp):
    """gates_*: (S,B,3H) precomputed input projections. Returns per-direction
    detection-logit contributions lf, lb of shape (S,B,1)."""
    S, B, H3 = gates_f.shape
    H = H3 // 3
    kern = functools.partial(_bigru_step_kernel, H=H)
    return pl.pallas_call(
        kern,
        out_shape=(jax.ShapeDtypeStruct((S, B, 1), F32),
                   jax.ShapeDtypeStruct((S, B, 1), F32)),
        grid=(S,),
        in_specs=[
            pl.BlockSpec((1, B, H3), lambda t: (t, 0, 0)),            # fwd gates
            pl.BlockSpec((1, B, H3), lambda t: (S - 1 - t, 0, 0)),    # bwd gates
            pl.BlockSpec((H, H3), lambda t: (0, 0)),
            pl.BlockSpec((1, H3), lambda t: (0, 0)),
            pl.BlockSpec((H, H3), lambda t: (0, 0)),
            pl.BlockSpec((1, H3), lambda t: (0, 0)),
            pl.BlockSpec((H, 1), lambda t: (0, 0)),
            pl.BlockSpec((H, 1), lambda t: (0, 0)),
        ],
        out_specs=(pl.BlockSpec((1, B, 1), lambda t: (t, 0, 0)),
                   pl.BlockSpec((1, B, 1), lambda t: (S - 1 - t, 0, 0))),
        scratch_shapes=[pltpu.VMEM((B, H), F32),      # persistent fwd hidden
                        pltpu.VMEM((B, H), F32)],     # persistent bwd hidden
        compiler_params=pltpu.CompilerParams(dimension_semantics=("arbitrary",)),
    )(gates_f, gates_b, gp['wh_f'], gp['bh_f'], gp['wh_b'], gp['bh_b'],
      gp['wl_f'], gp['wl_b'])


def _detect_softmask_kernel(lf_ref, lb_ref, bl_ref, e_ref, me_ref, p_ref, es_ref):
    logit = lf_ref[0] + lb_ref[0] + bl_ref[...]        # (S,1)
    p = jax.nn.sigmoid(logit)
    p_ref[0] = p
    e = e_ref[0]                                       # (S,E)
    es_ref[0] = (p * me_ref[...] + (1.0 - p) * e).astype(es_ref.dtype)


def detect_softmask_pallas(lf, lb, bl, e, mask_e):
    """Fused detector head sigmoid(lf+lb+bl) and soft-mask over e. Returns
    (p (B,S,1) f32, e_soft (B,S,E) bf16)."""
    B, S, E = e.shape
    return pl.pallas_call(
        _detect_softmask_kernel,
        out_shape=(jax.ShapeDtypeStruct((B, S, 1), F32),
                   jax.ShapeDtypeStruct((B, S, E), BF16)),
        grid=(B,),
        in_specs=[pl.BlockSpec((1, S, 1), lambda b: (b, 0, 0)),
                  pl.BlockSpec((1, S, 1), lambda b: (b, 0, 0)),
                  pl.BlockSpec((1, 1), lambda b: (0, 0)),
                  pl.BlockSpec((1, S, E), lambda b: (b, 0, 0)),
                  pl.BlockSpec((1, E), lambda b: (0, 0))],
        out_specs=(pl.BlockSpec((1, S, 1), lambda b: (b, 0, 0)),
                   pl.BlockSpec((1, S, E), lambda b: (b, 0, 0))),
        compiler_params=pltpu.CompilerParams(dimension_semantics=("parallel",)),
    )(lf, lb, bl, e, mask_e)


# ----------------------------------------------------------------------------
# Attention (all heads per batch element, query-tiled grid)
# ----------------------------------------------------------------------------

def _attn_kernel(q_ref, kv_ref, mask_ref, o_ref, *, nh, dh, scale):
    E = nh * dh
    q_all = q_ref[0]                                   # (bq, 3E) this query tile
    kv_all = kv_ref[0]                                 # (S, 3E) full keys/values
    add = (1.0 - mask_ref[0].astype(F32)) * -10000.0   # (1, S) additive mask
    # Static unroll over heads; each head's temporaries die at its store, so
    # there is no concatenate / no nh simultaneous contexts alive.
    # TODO(synk): for large nh with lane-aligned dh, switch to a bounded-unroll
    # lax.fori_loop over pl.ds head slices and pair heads to fill the 256-wide MXU.
    for h in range(nh):
        q = q_all[:, h * dh:(h + 1) * dh].astype(BF16)
        k = kv_all[:, E + h * dh:E + (h + 1) * dh].astype(BF16)
        v = kv_all[:, 2 * E + h * dh:2 * E + (h + 1) * dh].astype(BF16)
        s = jnp.dot(q, k.T, preferred_element_type=F32) * scale + add
        s = s - jnp.max(s, axis=-1, keepdims=True)
        p = jnp.exp(s)
        p = p * pl.reciprocal(jnp.sum(p, axis=-1, keepdims=True), approx=True)
        ctx = jnp.dot(p.astype(BF16), v, preferred_element_type=F32)
        o_ref[0, :, h * dh:(h + 1) * dh] = ctx.astype(o_ref.dtype)


def attention_pallas(qkv, mask, nh, tq=256):
    """qkv: (B,S,3E) bf16, mask: (B,1,S) in {0,1}. Returns context (B,S,E) bf16."""
    B, S, E3 = qkv.shape
    E = E3 // 3
    dh = E // nh
    bq = _tile(S, tq, 8)
    kern = functools.partial(_attn_kernel, nh=nh, dh=dh, scale=1.0 / (dh ** 0.5))
    return pl.pallas_call(
        kern,
        out_shape=jax.ShapeDtypeStruct((B, S, E), BF16),
        grid=(B, S // bq),
        in_specs=[pl.BlockSpec((1, bq, E3), lambda b, q: (b, q, 0)),   # queries
                  pl.BlockSpec((1, S, E3), lambda b, q: (b, 0, 0)),    # keys/values
                  pl.BlockSpec((1, 1, S), lambda b, q: (b, 0, 0))],
        out_specs=pl.BlockSpec((1, bq, E), lambda b, q: (b, q, 0)),
        compiler_params=pltpu.CompilerParams(
            dimension_semantics=("parallel", "parallel")),
    )(qkv, qkv, mask)


# ----------------------------------------------------------------------------
# Vocab projection + LogSoftmax (V-tiled, online logsumexp)
# ----------------------------------------------------------------------------

def _vocab_logits_kernel(x_ref, w_ref, b_ref, logits_ref, lse_ref, m_sc, l_sc):
    j = pl.program_id(1)

    @pl.when(j == 0)
    def _():
        m_sc[...] = jnp.full_like(m_sc, -jnp.inf)
        l_sc[...] = jnp.zeros_like(l_sc)

    x = x_ref[...].astype(BF16)
    logits = jnp.dot(x, w_ref[...], preferred_element_type=F32) + b_ref[...]
    logits_ref[...] = logits.astype(logits_ref.dtype)          # bf16 raw logits
    m_prev = m_sc[...]
    m_new = jnp.maximum(m_prev, jnp.max(logits, axis=-1, keepdims=True))
    l_sc[...] = (l_sc[...] * jnp.exp(m_prev - m_new)
                 + jnp.sum(jnp.exp(logits - m_new), axis=-1, keepdims=True))
    m_sc[...] = m_new

    @pl.when(j == pl.num_programs(1) - 1)
    def _():
        lse_ref[...] = m_sc[...] + jnp.log(l_sc[...])


def _logsoftmax_finalize_kernel(logits_ref, lse_ref, o_ref):
    o_ref[...] = logits_ref[...].astype(F32) - lse_ref[...]


def cls_logsoftmax_pallas(x, w, b, tm=256, tv=2048):
    """Vocab projection + LogSoftmax with the vocab axis streamed in bv-wide
    blocks (online max/logsumexp) — never holds the full (E,V) weight or a
    full (bm,V) logits row block in VMEM."""
    M, K = x.shape
    V = w.shape[1]
    bm = _tile(M, tm, 8)
    if V <= tv:
        bv, Vp = V, V
    else:
        bv = tv                                       # multiple of 128
        Vp = pl.cdiv(V, bv) * bv
        w = jnp.pad(w, ((0, 0), (0, Vp - V)))
        b = jnp.pad(b, (0, Vp - V), constant_values=-1e9)   # vanishes from lse

    logits_raw, lse = pl.pallas_call(
        _vocab_logits_kernel,
        out_shape=(jax.ShapeDtypeStruct((M, Vp), BF16),
                   jax.ShapeDtypeStruct((M, 1), F32)),
        grid=(M // bm, Vp // bv),
        in_specs=[pl.BlockSpec((bm, K), lambda i, j: (i, 0)),
                  pl.BlockSpec((K, bv), lambda i, j: (0, j)),
                  pl.BlockSpec((1, bv), lambda i, j: (0, j))],
        out_specs=(pl.BlockSpec((bm, bv), lambda i, j: (i, j)),
                   pl.BlockSpec((bm, 1), lambda i, j: (i, 0))),
        scratch_shapes=[pltpu.VMEM((bm, 1), F32), pltpu.VMEM((bm, 1), F32)],
        compiler_params=pltpu.CompilerParams(
            dimension_semantics=("parallel", "arbitrary"),
            vmem_limit_bytes=_VMEM_LIMIT),
    )(x, w, b.reshape(1, Vp))

    logp = pl.pallas_call(
        _logsoftmax_finalize_kernel,
        out_shape=jax.ShapeDtypeStruct((M, Vp), F32),
        grid=(M // bm, Vp // bv),
        in_specs=[pl.BlockSpec((bm, bv), lambda i, j: (i, j)),
                  pl.BlockSpec((bm, 1), lambda i, j: (i, 0))],
        out_specs=pl.BlockSpec((bm, bv), lambda i, j: (i, j)),
        compiler_params=pltpu.CompilerParams(
            dimension_semantics=("parallel", "parallel")),
    )(logits_raw, lse)
    return logp[:, :V] if Vp != V else logp


# ----------------------------------------------------------------------------
# Model forward (glue in plain JAX, hot paths in Pallas)
# ----------------------------------------------------------------------------

def soft_masked_bert_forward(params, batch):
    input_ids = batch['error_ids']
    input_mask = batch['error_masks'].astype(F32)
    segment_ids = batch['error_segment_ids']
    detection_labels = batch['detection_labels'].astype(F32)
    correct_ids = batch['correct_ids']

    B, S = input_ids.shape
    V, E = params['word_emb'].shape
    nh = params['num_heads']

    # --- BertEmbeddings: word + position + token_type, LayerNorm (eval mode)
    we = jnp.take(params['word_emb'], input_ids, axis=0)        # (B,S,E)
    te = jnp.take(params['type_emb'], segment_ids, axis=0)      # (B,S,E)
    pe = params['pos_emb'][:S]                                  # (S,E) - reused per batch
    e = emb_layernorm_pallas(we, te, pe, params['emb_ln_g'], params['emb_ln_b'])

    # --- mask-token embedding (position 0, token_type 0), as in self.mask_e
    m_we = params['word_emb'][params['mask_token_id']][None, None]
    m_te = params['type_emb'][0][None, None]
    m_pe = params['pos_emb'][0][None]
    mask_e = emb_layernorm_pallas(m_we, m_te, m_pe, params['emb_ln_g'],
                                  params['emb_ln_b']).reshape(1, E)

    # --- detector: BiGRU.  Gate projections hoisted out of the recurrence.
    # TODO(synk): multi-layer stacked BiGRU (cfg.layer_n > 1) not implemented.
    gp = params['gru']
    H = gp['wh_f'].shape[0]
    e_sb = jnp.transpose(e, (1, 0, 2)).reshape(S * B, E)         # time-major
    gates_f = linear_pallas(e_sb, gp['wi_f'], gp['bi_f'],
                            out_dtype=F32).reshape(S, B, 3 * H)
    gates_b = linear_pallas(e_sb, gp['wi_b'], gp['bi_b'],
                            out_dtype=F32).reshape(S, B, 3 * H)
    lf, lb = bigru_recurrence_pallas(gates_f, gates_b, gp)       # (S,B,1) each
    lf = jnp.transpose(lf, (1, 0, 2))                            # (B,S,1) - tiny
    lb = jnp.transpose(lb, (1, 0, 2))

    # --- fused detector head (sigmoid linear) + soft masking
    p, e_soft = detect_softmask_pallas(lf, lb, gp['bl'], e, mask_e)
    h = e_soft.reshape(B * S, E)                                 # bf16 encoder input

    # --- attention mask stays (B,1,S); additive transform happens in-kernel
    mask_b = input_mask.reshape(B, 1, S)

    # --- corrector: BERT encoder layers (bf16 inter-kernel activations)
    for lp in params['layers']:
        resid = h
        qkv = linear_pallas(h, lp['w_qkv'], lp['b_qkv'])                    # fused QKV
        ctx = attention_pallas(qkv.reshape(B, S, 3 * E), mask_b, nh)
        h1 = linear_residual_ln_pallas(ctx.reshape(B * S, E), lp['wo'], lp['bo'],
                                       resid, lp['ln1_g'], lp['ln1_b'])
        inter = linear_pallas(h1, lp['wi'], lp['bi'], activation="gelu")    # fused GELU
        h = linear_residual_ln_pallas(inter, lp['wo2'], lp['bo2'], h1,
                                      lp['ln2_g'], lp['ln2_b'])

    # --- V-tiled vocab projection + LogSoftmax
    logits = cls_logsoftmax_pallas(h, params['cls_w'], params['cls_b'])
    logits = logits.reshape(B, S, V)

    # --- losses (tiny scalar reductions; kept as JAX glue)
    prob = p.reshape(B, S)
    log_p = jnp.maximum(jnp.log(prob), -100.0)          # BCELoss log clamp
    log_1mp = jnp.maximum(jnp.log(1.0 - prob), -100.0)
    loss_d = -jnp.mean(detection_labels * log_p + (1.0 - detection_labels) * log_1mp)
    nll = -jnp.take_along_axis(logits, correct_ids[..., None], axis=-1)[..., 0]
    loss_c = jnp.mean(nll)
    loss = 0.9 * loss_c + 0.1 * loss_d

    # TODO(synk): tokenizer-based string decoding (ids_2_str / ids_prob_2_str)
    # has no Pallas/JAX equivalent; returning None as in training mode.
    return {'loss': loss, 'logits': logits,
            'strings_error': None, 'strings_predict': None, 'strings_correct': None}


# ----------------------------------------------------------------------------
# Deterministic parameter initialization
# ----------------------------------------------------------------------------

def init_params(key, *, vocab=128, E=32, max_pos=16, n_layers=2, n_heads=4,
                inter=64, gru_hidden=16, mask_token_id=4):
    keys = iter(jax.random.split(key, 256))

    def nrm(shape, std=0.02):
        return jax.random.normal(next(keys), shape, F32) * std

    def uni(shape, k):
        return jax.random.uniform(next(keys), shape, F32, minval=-k, maxval=k)

    params = {
        'word_emb': nrm((vocab, E)),
        'pos_emb': nrm((max_pos, E)),
        'type_emb': nrm((2, E)),
        'emb_ln_g': jnp.ones((E,), F32),
        'emb_ln_b': jnp.zeros((E,), F32),
        'num_heads': n_heads,
        'mask_token_id': mask_token_id,
        # matmul weights stored bf16 (MXU operands); biases / LN params stay f32
        'cls_w': nrm((E, vocab)).astype(BF16),
        'cls_b': jnp.zeros((vocab,), F32),
    }

    layers = []
    for _ in range(n_layers):
        wq, wk, wv = nrm((E, E)), nrm((E, E)), nrm((E, E))
        layers.append({
            'w_qkv': jnp.concatenate([wq, wk, wv], axis=1).astype(BF16),   # (E,3E)
            'b_qkv': jnp.zeros((3 * E,), F32),
            'wo': nrm((E, E)).astype(BF16), 'bo': jnp.zeros((E,), F32),
            'ln1_g': jnp.ones((E,), F32), 'ln1_b': jnp.zeros((E,), F32),
            'wi': nrm((E, inter)).astype(BF16), 'bi': jnp.zeros((inter,), F32),
            'wo2': nrm((inter, E)).astype(BF16), 'bo2': jnp.zeros((E,), F32),
            'ln2_g': jnp.ones((E,), F32), 'ln2_b': jnp.zeros((E,), F32),
        })
    params['layers'] = layers

    H = gru_hidden
    kg = 1.0 / (H ** 0.5)
    kl = 1.0 / ((2 * H) ** 0.5)
    # PyTorch GRU weight_ih is (3H,E) [r;z;n]; stored here transposed (E,3H) per
    # direction so the input projections can be hoisted into tiled matmuls.
    wl = uni((2 * H, 1), kl)
    params['gru'] = {
        'wi_f': uni((E, 3 * H), kg).astype(BF16), 'bi_f': uni((3 * H,), kg),
        'wi_b': uni((E, 3 * H), kg).astype(BF16), 'bi_b': uni((3 * H,), kg),
        'wh_f': uni((H, 3 * H), kg), 'bh_f': uni((1, 3 * H), kg),
        'wh_b': uni((H, 3 * H), kg), 'bh_b': uni((1, 3 * H), kg),
        'wl_f': wl[:H, :], 'wl_b': wl[H:, :], 'bl': uni((1, 1), kl),
    }
    return params


# ----------------------------------------------------------------------------

if __name__ == "__main__":
    key = jax.random.PRNGKey(0)
    kp, k1, k2, k3 = jax.random.split(key, 4)

    B, S, vocab = 2, 8, 128
    params = init_params(kp, vocab=vocab, E=32, max_pos=16, n_layers=2,
                         n_heads=4, inter=64, gru_hidden=16, mask_token_id=4)

    input_ids = jax.random.randint(k1, (B, S), 0, vocab, dtype=jnp.int32)
    correct_ids = jax.random.randint(k2, (B, S), 0, vocab, dtype=jnp.int32)
    detection_labels = jax.random.randint(k3, (B, S), 0, 2, dtype=jnp.int32)
    input_mask = jnp.ones((B, S), jnp.int32).at[1, S - 1].set(0)
    segment_ids = jnp.zeros((B, S), jnp.int32)

    batch = {
        'error_ids': input_ids,
        'error_masks': input_mask,
        'error_segment_ids': segment_ids,
        'detection_labels': detection_labels,
        'correct_ids': correct_ids,
    }

    out = soft_masked_bert_forward(params, batch)
    jax.block_until_ready(out['loss'])
    jax.block_until_ready(out['logits'])
    print("KERNEL_OK")
</pallas_src>

<mosaic_0001>
module attributes {stable_mosaic.version = 11 : i64} {
  func.func @_emb_ln_kernel(%arg0: i32, %arg1: memref<1x8x32xf32, #tpu.memory_space<vmem>>, %arg2: memref<1x8x32xf32, #tpu.memory_space<vmem>>, %arg3: memref<8x32xf32, #tpu.memory_space<vmem>>, %arg4: memref<1x32xf32, #tpu.memory_space<vmem>>, %arg5: memref<1x32xf32, #tpu.memory_space<vmem>>, %arg6: memref<1x8x32xf32, #tpu.memory_space<vmem>>) attributes {dimension_semantics = [#tpu.dimension_semantics<parallel>], iteration_bounds = array<i64: 2>, scalar_prefetch = 0 : i64, scratch_operands = 0 : i64, tpu.core_type = #tpu.core_type<tc>, window_params = [{transform_indices = @transform_0, window_bounds = array<i64: 1, 8, 32>}, {transform_indices = @transform_1, window_bounds = array<i64: 1, 8, 32>}, {pipeline_mode = #tpu.pipeline_mode<synchronous>, transform_indices = @transform_2, window_bounds = array<i64: 8, 32>}, {pipeline_mode = #tpu.pipeline_mode<synchronous>, transform_indices = @transform_3, window_bounds = array<i64: 1, 32>}, {pipeline_mode = #tpu.pipeline_mode<synchronous>, transform_indices = @transform_4, window_bounds = array<i64: 1, 32>}, {transform_indices = @transform_5, window_bounds = array<i64: 1, 8, 32>}]} {
    %c0 = arith.constant 0 : index
    %c0_0 = arith.constant 0 : index
    %c0_1 = arith.constant 0 : index
    %0 = vector.load %arg1[%c0, %c0_0, %c0_1] : memref<1x8x32xf32, #tpu.memory_space<vmem>>, vector<1x8x32xf32>
    %1 = vector.shape_cast %0 : vector<1x8x32xf32> to vector<8x32xf32>
    %c0_2 = arith.constant 0 : index
    %c0_3 = arith.constant 0 : index
    %c0_4 = arith.constant 0 : index
    %2 = vector.load %arg2[%c0_2, %c0_3, %c0_4] : memref<1x8x32xf32, #tpu.memory_space<vmem>>, vector<1x8x32xf32>
    %3 = vector.shape_cast %2 : vector<1x8x32xf32> to vector<8x32xf32>
    %4 = arith.addf %1, %3 : vector<8x32xf32>
    %c0_5 = arith.constant 0 : index
    %c0_6 = arith.constant 0 : index
    %5 = vector.load %arg3[%c0_5, %c0_6] : memref<8x32xf32, #tpu.memory_space<vmem>>, vector<8x32xf32>
    %6 = arith.addf %4, %5 : vector<8x32xf32>
    %cst = arith.constant dense<0.000000e+00> : vector<8xf32>
    %7 = vector.multi_reduction <add>, %6, %cst [1] : vector<8x32xf32> to vector<8xf32>
    %8 = vector.shape_cast %7 : vector<8xf32> to vector<8x1xf32>
    %cst_7 = arith.constant 3.200000e+01 : f32
    %9 = vector.broadcast %cst_7 : f32 to vector<8x1xf32>
    %10 = arith.divf %8, %9 : vector<8x1xf32>
    %11 = vector.broadcast %10 : vector<8x1xf32> to vector<8x32xf32>
    %12 = arith.subf %6, %11 : vector<8x32xf32>
    %13 = arith.mulf %12, %12 : vector<8x32xf32>
    %cst_8 = arith.constant dense<0.000000e+00> : vector<8xf32>
    %14 = vector.multi_reduction <add>, %13, %cst_8 [1] : vector<8x32xf32> to vector<8xf32>
    %15 = vector.shape_cast %14 : vector<8xf32> to vector<8x1xf32>
    %cst_9 = arith.constant 3.200000e+01 : f32
    %16 = vector.broadcast %cst_9 : f32 to vector<8x1xf32>
    %17 = arith.divf %15, %16 : vector<8x1xf32>
    %18 = vector.broadcast %10 : vector<8x1xf32> to vector<8x32xf32>
    %19 = arith.subf %6, %18 : vector<8x32xf32>
    %cst_10 = arith.constant 9.99999996E-13 : f32
    %20 = vector.broadcast %cst_10 : f32 to vector<8x1xf32>
    %21 = arith.addf %17, %20 : vector<8x1xf32>
    %22 = math.rsqrt %21 : vector<8x1xf32>
    %23 = vector.broadcast %22 : vector<8x1xf32> to vector<8x32xf32>
    %24 = arith.mulf %19, %23 : vector<8x32xf32>
    %c0_11 = arith.constant 0 : index
    %c0_12 = arith.constant 0 : index
    %25 = vector.load %arg4[%c0_11, %c0_12] : memref<1x32xf32, #tpu.memory_space<vmem>>, vector<1x32xf32>
    %26 = vector.broadcast %25 : vector<1x32xf32> to vector<8x32xf32>
    %27 = arith.mulf %24, %26 : vector<8x32xf32>
    %c0_13 = arith.constant 0 : index
    %c0_14 = arith.constant 0 : index
    %28 = vector.load %arg5[%c0_13, %c0_14] : memref<1x32xf32, #tpu.memory_space<vmem>>, vector<1x32xf32>
    %29 = vector.broadcast %28 : vector<1x32xf32> to vector<8x32xf32>
    %30 = arith.addf %27, %29 : vector<8x32xf32>
    %c0_15 = arith.constant 0 : index
    %c0_16 = arith.constant 0 : index
    %c0_17 = arith.constant 0 : index
    %31 = vector.load %arg6[%c0_15, %c0_16, %c0_17] : memref<1x8x32xf32, #tpu.memory_space<vmem>>, vector<1x8x32xf32>
    %32 = vector.shape_cast %31 : vector<1x8x32xf32> to vector<8x32xf32>
    %33 = vector.shape_cast %30 : vector<8x32xf32> to vector<1x8x32xf32>
    tpu.vector_store %arg6[%c0_15, %c0_16, %c0_17], %33 {strides = array<i32>} : memref<1x8x32xf32, #tpu.memory_space<vmem>>, vector<1x8x32xf32>,
    return
  }
  func.func @transform_0(%arg0: i32) -> (i32, i32, i32) {
    %c0_i32 = arith.constant 0 : i32
    %c0_i32_0 = arith.constant 0 : i32
    %c0_i32_1 = arith.constant 0 : i32
    return %arg0, %c0_i32, %c0_i32_0 : i32, i32, i32
  }
  func.func @transform_1(%arg0: i32) -> (i32, i32, i32) {
    %c0_i32 = arith.constant 0 : i32
    %c0_i32_0 = arith.constant 0 : i32
    %c0_i32_1 = arith.constant 0 : i32
    return %arg0, %c0_i32, %c0_i32_0 : i32, i32, i32
  }
  func.func @transform_2(%arg0: i32) -> (i32, i32) {
    %c0_i32 = arith.constant 0 : i32
    %c0_i32_0 = arith.constant 0 : i32
    %c0_i32_1 = arith.constant 0 : i32
    return %c0_i32, %c0_i32_0 : i32, i32
  }
  func.func @transform_3(%arg0: i32) -> (i32, i32) {
    %c0_i32 = arith.constant 0 : i32
    %c0_i32_0 = arith.constant 0 : i32
    %c0_i32_1 = arith.constant 0 : i32
    return %c0_i32, %c0_i32_0 : i32, i32
  }
  func.func @transform_4(%arg0: i32) -> (i32, i32) {
    %c0_i32 = arith.constant 0 : i32
    %c0_i32_0 = arith.constant 0 : i32
    %c0_i32_1 = arith.constant 0 : i32
    return %c0_i32, %c0_i32_0 : i32, i32
  }
  func.func @transform_5(%arg0: i32) -> (i32, i32, i32) {
    %c0_i32 = arith.constant 0 : i32
    %c0_i32_0 = arith.constant 0 : i32
    %c0_i32_1 = arith.constant 0 : i32
    return %arg0, %c0_i32, %c0_i32_0 : i32, i32, i32
  }
}

</mosaic_0001>

<bundles_post_ra>
// kernel: tpu_custom_call.1
= control target key start
LH: loop header
LB: loop body
LE: loop exit
PB: predicated region body
PF: predicated region fallthrough
CT: control target
= control target key end

     0   :  { %s934_s0 = inlined_call_operand.hbm [shape: f32[2,8,32], index: 0, kind: input, shape index: {}]   ;;  %s935_s1 = inlined_call_operand.hbm [shape: f32[2,8,32], index: 1, kind: input, shape index: {}]   ;;  %s936_s2 = inlined_call_operand.hbm [shape: f32[8,32], index: 2, kind: input, shape index: {}]   ;;  %s937_s3 = inlined_call_operand.vmem [shape: f32[1,32], index: 3, kind: input, shape index: {}]   ;;  %s938_s4 = inlined_call_operand.vmem [shape: f32[1,32], index: 4, kind: input, shape index: {}]   ;;  %s939_s5 = inlined_call_operand.hbm [shape: f32[2,8,32], index: 5, kind: output, shape index: {}]  }
   0x1   :  { %944 = sst [smem:[#allocation14_spill]] %s936_s2 }
   0x2   :  { %10 = vsyncpa [#allocation3], 0 }
   0x3   :  { %12 = vsyncpa [#allocation3 + $0x1], 0 }
   0x4   :  { %13 = vsyncpa [#allocation6], 0 }
   0x5   :  { %15 = vsyncpa [#allocation6 + $0x1], 0 }
   0x6   :  { %16 = vsyncpa [#allocation4], 0 }
   0x7   :  { %18 = vsyncpa [#allocation4 + $0x1], 0  ;;  %s715_s18 = smov 0   ;;  %s717_s19 = smov 0  }
   0x8   :  { %s719_s20 = smov 0   ;;  %s721_s21 = smov 0  }
   0x9 LB: > { %s736_s22 = sadd.s32 4294967295, %s679_s21   ;;  %s442_s23 = sadd.s32 4294967294, %s679_s21   ;;  %s679_s21 = sphi %s721_s21, %s966_s21   ;;  %s675_s20 = sphi %s719_s20, %s965_s20   ;;  %s671_s19 = sphi %s717_s19, %s964_s19   ;;  %s667_s18 = sphi %s715_s18, %s963_s18  }
   0xa   : > { %p44_p0 = scmp.ne.s32.totalorder %s671_s19, %s667_s18  ;;  %p940_p1 = scmp.eq.s32.totalorder %s736_s22, 0 }
   0xb   : > { %p163_p3 = scmp.eq.s32.totalorder %s442_s23, 1  ;;  %p443_p5 = scmp.ge.s32.totalorder %s679_s21, 1 }
   0xc   : > { %p745_p4 = por %p940_p1, %p44_p0  ;;  %p170_p7 = scmp.lt.s32.totalorder %s679_s21, 3 }
   0xd   : > { %p750_p6 = por %p163_p3, %p44_p0  ;;  %s681_s27 = smov [#allocation7]  }
   0xe   : > { %s945_s24 = scalar_select %p745_p4, 1, 0 }
   0xf   : > { %s946_s25 = scalar_select %p750_p6, 1, 0 }
  0x10   : > { %p755_p8 = pnand %p443_p5, %p170_p7  ;;  %s183_s28 = sshll.u32 %s681_s27, 4  ;;  %s184_s28 = int_to_ptr.vmem [resolvable:$true] %s183_s28 }
  0x11   : > { %s763_s29 = sadd.s32 1, %s679_s21   ;;  %s31_s8 = sadd.s32 1, %s675_s20 }
  0x12   : > { %s947_s26 = scalar_select %p755_p8, 1, 0 }
  0x13   : > { %p471_p10 = pneg %p755_p8  ;;  %s28_s6 = ssub.s32 %s679_s21, %s763_s29 }
  0x14   : > { %p773_p12 = scmp.eq.s32.totalorder %s28_s6, 0  ;;  %p38_p13 = scmp.ne.s32.totalorder %s675_s20, %s671_s19 }
  0x15   : > { %p767_p11 = pnand %p471_p10, %p940_p1  ;;  %s536_s9 = scalar_lea.vmem %s184_s28, 128 }
  0x16   : > { %p537_p3 = scmp.ne.s32.totalorder %s184_s28, %s536_s9  ;;  %p544_p9 = scmp.lt.s32.totalorder %s184_s28, %s184_s28 }
  0x17   : > { %p527_p0 = pneg %p767_p11  ;;  %p545_p2 = scmp.lt.s32.totalorder %s536_s9, %s536_s9 }
  0x19   : > { %p539_p5 = pnand %p537_p3, %p527_p0  ;;  %p546_p10 = por %p545_p2, %p544_p9 }
  0x1b   : > { %p540_p7 = pneg %p539_p5 }
  0x1d   : > { %p547_p1 = pnand %p546_p10, %p540_p7 }
  0x1f   : > { %550 = shalt.err (!%p547_p1)
}
  0x20   : > { %s950_s2 = sld [smem:[#allocation14_spill]]  ;;  %p39_p1 = scmp.eq.s32.totalorder %s679_s21, 0 }
  0x21   : > { %s790_s12 = scalar_select %p773_p12, %s675_s20, %s31_s8  }
  0x22   : > { %p952_p2 = scmp.eq.s32.totalorder %s736_s22, 1  ;;  %p487_p0 = scmp.lt.s32.totalorder %s679_s21, 2 }
  0x23   : > { %951 = sst [smem:[#allocation13_spill]] %s790_s12  ;;  %s200_s14 = sand.u32 1, %s675_s20  }
  0x24   : > { %p798_p9 = por %p952_p2, %p38_p13  ;;  %p40_p3 = por %p39_p1, %p38_p13 }
  0x25   : > { %s807_s15 = sshll.u32 %s200_s14, 3  ;;  %s447_s16 = sshll.u32 %s679_s21, 7 }
  0x26   : > { %474 = dma.hbm_to_vmem [thread:$0]  (!%p767_p11), %s950_s2, 128, %s184_s28, [#allocation6]  }
  0x27   : > { %s953_s13 = scalar_select %p798_p9, 1, 0 }
  0x28   : > { %s813_s27 = scalar_lea.hbm %s934_s0, %s447_s16  ;;  %s204_s28 = scalar_lea.vmem [#allocation2], %s807_s15 }
  0x29   : > { %s211_s30 = sshll.u32 %s204_s28, 4  ;;  %p816_p11 = pnand %p487_p0, %p40_p3  ;;  %s212_s30 = int_to_ptr.vmem [resolvable:$true] %s211_s30 }
  0x2a   : > { %s823_s9 = scalar_lea.hbm %s935_s1, %s447_s16  ;;  %s201_s10 = scalar_lea.sflag [#allocation3], %s200_s14 }
  0x2b   : > { %s551_s11 = scalar_lea.hbm %s813_s27, 128  ;;  %p553_p13 = pneg %p816_p11 }
  0x2c   : > { %p552_p12 = scmp.ne.s32.totalorder %s813_s27, %s551_s11  ;;  %s556_s28 = scalar_lea.hbm %s934_s0, 256 }
  0x2d   : > { %p557_p10 = scmp.lt.s32.totalorder %s813_s27, %s934_s0  ;;  %p558_p1 = scmp.lt.s32.totalorder %s556_s28, %s551_s11 }
  0x2e   : > { %p554_p5 = pnand %p553_p13, %p552_p12 }
  0x2f   : > { %p559_p2 = por %p558_p1, %p557_p10 }
  0x30   : > { %p555_p7 = pneg %p554_p5 }
  0x32   : > { %p560_p0 = pnand %p559_p2, %p555_p7 }
  0x34   : > { %563 = shalt.err (!%p560_p0)
}
  0x35   : > { %s564_s14 = scalar_lea.vmem %s212_s30, 128  ;;  %s682_s16 = smov [#allocation2]  }
  0x36   : > { %p565_p3 = scmp.ne.s32.totalorder %s212_s30, %s564_s14  ;;  %s569_s7 = sshll.u32 %s682_s16, 4  ;;  %s570_s7 = int_to_ptr.vmem [resolvable:$false] %s569_s7 }
  0x37   : > { %s571_s8 = scalar_lea.vmem %s570_s7, 256  ;;  %p572_p5 = scmp.lt.s32.totalorder %s212_s30, %s570_s7 }
  0x38   : > { %p567_p6 = pnand %p565_p3, %p553_p13  ;;  %p573_p9 = scmp.lt.s32.totalorder %s571_s8, %s564_s14 }
  0x3a   : > { %p568_p12 = pneg %p567_p6  ;;  %p574_p4 = por %p573_p9, %p572_p5 }
  0x3c   : > { %p575_p8 = pnand %p574_p4, %p568_p12 }
  0x3e   : > { %578 = shalt.err (!%p575_p8)
}
  0x3f   : > { %478 = dma.hbm_to_vmem [thread:$0]  (!%p816_p11), %s813_s27, 128, %s212_s30, %s201_s10  }
  0x40   : > { %s218_s2 = sand.u32 1, %s679_s21   ;;  %s222_s12 = scalar_lea.vmem [#allocation5], %s807_s15 }
  0x41   : > { %s229_s11 = sshll.u32 %s222_s12, 4  ;;  %s219_s17 = scalar_lea.sflag [#allocation6], %s218_s2  ;;  %s230_s11 = int_to_ptr.vmem [resolvable:$true] %s229_s11 }
  0x42   : > { %s579_s23 = scalar_lea.hbm %s823_s9, 128  ;;  %s584_s16 = scalar_lea.hbm %s935_s1, 256 }
  0x43   : > { %p580_p6 = scmp.ne.s32.totalorder %s823_s9, %s579_s23  ;;  %p585_p9 = scmp.lt.s32.totalorder %s823_s9, %s935_s1 }
  0x44   : > { %p586_p7 = scmp.lt.s32.totalorder %s584_s16, %s579_s23 }
  0x45   : > { %p582_p4 = pnand %p580_p6, %p553_p13 }
  0x46   : > { %p587_p10 = por %p586_p7, %p585_p9 }
  0x47   : > { %p583_p8 = pneg %p582_p4 }
  0x49   : > { %p588_p1 = pnand %p587_p10, %p583_p8 }
  0x4b   : > { %591 = shalt.err (!%p588_p1)
}
  0x4c   : > { %s592_s15 = scalar_lea.vmem %s230_s11, 128  ;;  %s683_s27 = smov [#allocation5]  }
  0x4d   : > { %p593_p2 = scmp.ne.s32.totalorder %s230_s11, %s592_s15  ;;  %s597_s30 = sshll.u32 %s683_s27, 4  ;;  %s598_s30 = int_to_ptr.vmem [resolvable:$false] %s597_s30 }
  0x4e   : > { %s599_s10 = scalar_lea.vmem %s598_s30, 256  ;;  %p600_p12 = scmp.lt.s32.totalorder %s230_s11, %s598_s30 }
  0x4f   : > { %p595_p0 = pnand %p593_p2, %p553_p13  ;;  %p601_p5 = scmp.lt.s32.totalorder %s599_s10, %s592_s15 }
  0x51   : > { %p596_p3 = pneg %p595_p0  ;;  %p602_p6 = por %p601_p5, %p600_p12 }
  0x53   : > { %p603_p4 = pnand %p602_p6, %p596_p3 }
  0x55   : > { %606 = shalt.err (!%p603_p4)
}
  0x56   : > { %481 = dma.hbm_to_vmem [thread:$0]  (!%p816_p11), %s823_s9, 128, %s230_s11, %s219_s17  }
  0x57   : > { %p955_p8 = scmp.ne.s32.totalorder %s947_s26, 0 }
  0x58   : > { %s868_s2 = sand.u32 (!%p955_p8), 1, %s671_s19   ;;  %p956_p13 = scmp.ne.s32.totalorder (!%p955_p8), %s945_s24, 0 }
  0x59   : > { %238 = sbr.rel (%p955_p8) target bundleno = 427 (0x1ab), region = 40  ;;  %s871_s12 = sshll.u32 (!%p955_p8), %s868_s2, 3 }
  0x5a   : > { %s241_s23 = scalar_lea.sflag (!%p955_p8), [#allocation3], %s868_s2  ;;  %s244_s28 = scalar_lea.vmem (!%p955_p8), [#allocation2], %s871_s12 }
  0x5e   : > { %650 = dma.done.wait (%p956_p13), %s241_s23, 128  }
  0x5f   : > { %652 = vsyncadd (%p956_p13), %s241_s23, 4294967168  ;;  %s249_s26 = sand.u32 1, %s736_s22   ;;  %s253_s9 = scalar_lea.vmem [#allocation5], %s871_s12 }
  0x60   : > { %s250_s6 = scalar_lea.sflag [#allocation6], %s249_s26 }
  0x61   : > { %654 = dma.done.wait (%p956_p13), %s250_s6, 128  }
  0x62   : > { %656 = vsyncadd (%p956_p13), %s250_s6, 4294967168  ;;  %p957_p11 = scmp.eq.s32.totalorder %s736_s22, 0 }
  0x64   : > { %658 = dma.done.wait (%p957_p11), [#allocation6], 128   ;;  %p958_p9 = pmov %p957_p11 }
  0x65   : > { %v289_v0 = vld [vmem:[%s244_s28] sm:$0xff]  ;;  %v290_v1 = vld [vmem:[%s253_s9] sm:$0xff]  ;;  %vm294_vm0 = vcmask 261120   ;;  %s458_s16 = sshll.u32 %s736_s22, 7  ;;  %s288_s7 = scalar_lea.vmem [#allocation8], %s871_s12 }
  0x66   : > { %660 = vsyncadd (%p958_p9), [#allocation6], 4294967168  ;;  %v292_v2 = vld [vmem:[#allocation7] sm:$0xff]  ;;  %v291_v3 = vadd.f32 %v290_v1, %v289_v0  ;;  %s340_s8 = sshll.u32 %s288_s7, 4  ;;  %s338_s30 = scalar_lea.hbm %s939_s5, %s458_s16  ;;  %s341_s8 = int_to_ptr.vmem [resolvable:$true] %s340_s8 }
  0x67   : > { %v455_v15 = vld [vmem:[%s937_s3] ss:$0 sm:$0xff]  ;;  %s327_s10 = scalar_lea.sflag [#allocation4], %s868_s2  ;;  %s607_s23 = scalar_lea.vmem %s341_s8, 128 }
  0x68   : > { %v293_v4 = vadd.f32 %v292_v2, %v291_v3  ;;  %v456_v17 = vld [vmem:[%s938_s4] ss:$0 sm:$0xff]  ;;  %p608_p7 = scmp.ne.s32.totalorder %s341_s8, %s607_s23  ;;  %p959_p10 = scmp.ne.s32.totalorder %s953_s13, 0 }
  0x69   : > { %s684_s28 = smov [#allocation8]  }
  0x6a   : > { %v295_v5 = vsel %vm294_vm0, %v293_v4, 0.0  ;;  %p609_p1 = pnand %p608_p7, %p959_p10  ;;  %s611_s26 = sshll.u32 %s684_s28, 4  ;;  %s612_s26 = int_to_ptr.vmem [resolvable:$false] %s611_s26 }
  0x6b   : > { %296 = vadd.xlane.f32.xlu0 %v295_v5  ;;  %s613_s22 = scalar_lea.vmem %s612_s26, 256  ;;  %p614_p0 = scmp.lt.s32.totalorder %s341_s8, %s612_s26 }
  0x6c   : > { %p610_p2 = pneg %p609_p1  ;;  %p615_p3 = scmp.lt.s32.totalorder %s613_s22, %s607_s23 }
  0x6e   : > { %p616_p12 = por %p615_p3, %p614_p0 }
  0x70   : > { %p617_p5 = pnand %p616_p12, %p610_p2 }
  0xf4   : > { %v297_v6 = vpop.xlane.xlu0 %296 }
  0xf5   : > { %v299_v7 = vmul.f32 0.03125, %v297_v6 }
  0xf7   : > { %v300_v8 = vsub.f32 %v293_v4, %v299_v7 }
  0xf9   : > { %v301_v9 = vmul.f32 %v300_v8, %v300_v8 }
  0xfb   : > { %v302_v10 = vsel %vm294_vm0, %v301_v9, 0.0 }
  0xfc   : > { %303 = vadd.xlane.f32.xlu0 %v302_v10 }
 0x185   : > { %v304_v11 = vpop.xlane.xlu0 %303 }
 0x186   : > { %v305_v12 = vmul.f32 0.03125, %v304_v11 }
 0x188   : > { %v306_v13 = vadd.f32 1e-12, %v305_v12 }
 0x18a   : > { %523 = vrsqrt.f32 %v306_v13 }
 0x197   : > { %v524_v14 = vpop.eup %523 }
 0x198   : > { %v308_v16 = vmul.f32 %v524_v14, %v300_v8 }
 0x19a   : > { %v316_v18 = vmul.f32 %v455_v15, %v308_v16 }
 0x19c   : > { %v324_v19 = vadd.f32 %v456_v17, %v316_v18 }
 0x19e   : > { %325 = vst.msk [vmem:[%s288_s7] sm:$0xff] %vm294_vm0, %v324_v19 }
 0x19f   : > { %620 = shalt.err (!%p617_p5)
}
 0x1a0   : > { %s621_s12 = scalar_lea.hbm %s338_s30, 128  ;;  %s625_s9 = scalar_lea.hbm %s939_s5, 256 }
 0x1a1   : > { %p622_p6 = scmp.ne.s32.totalorder %s338_s30, %s621_s12  ;;  %p626_p13 = scmp.lt.s32.totalorder %s338_s30, %s939_s5 }
 0x1a2   : > { %p627_p11 = scmp.lt.s32.totalorder %s625_s9, %s621_s12 }
 0x1a3   : > { %p623_p4 = pnand %p622_p6, %p959_p10 }
 0x1a4   : > { %p628_p9 = por %p627_p11, %p626_p13 }
 0x1a5   : > { %p624_p8 = pneg %p623_p4 }
 0x1a7   : > { %p629_p7 = pnand %p628_p9, %p624_p8 }
 0x1a9   : > { %632 = shalt.err (!%p629_p7)
}
 0x1aa   : > { %469 = dma.vmem_to_hbm [thread:$0]  (%p959_p10), %s341_s8, 128, %s338_s30, %s327_s10  }
 0x1ab PF: > { %s352_s17 = sand.u32 1, %s667_s18   ;;  %p960_p1 = scmp.ne.s32.totalorder %s946_s25, 0 }
 0x1ac   : > { %p961_p2 = scmp.ge.s32.totalorder %s679_s21, 2  ;;  %s353_s14 = scalar_lea.sflag [#allocation4], %s352_s17 }
 0x1ae   : > { %p483_p0 = pnand %p961_p2, %p960_p1 }
 0x1b0   : > { %p484_p3 = pneg %p483_p0 }
 0x1b2   : > { %662 = dma.done.wait (%p484_p3), %s353_s14, 128  }
 0x1b3   : > { %664 = vsyncadd (%p484_p3), %s353_s14, 4294967168  ;;  %s962_s16 = sld [smem:[#allocation13_spill]]  ;;  %p21_p12 = scmp.ge.s32.totalorder %s763_s29, 4  }
 0x1b4   : > { %s963_s18 = smov %s671_s19  ;;  %s964_s19 = smov %s675_s20 }
 0x1b5   : > { %s966_s21 = smov %s763_s29  ;;  %23 = sbr.rel (!%p21_p12) target bundleno = 9 (0x9), region = 102 }
 0x1b9   : > { %s965_s20 = smov %s962_s16 }
 0x1ba   :  { %358 = vsyncpa [#allocation3], 1 }
 0x1bb   :  { %360 = vsyncpa [#allocation3 + $0x1], 1 }
 0x1bc   :  { %361 = vsyncpa [#allocation6], 1 }
 0x1bd   :  { %363 = vsyncpa [#allocation6 + $0x1], 1 }
 0x1be   :  { %364 = vsyncpa [#allocation4], 1 }
 0x1bf   :  { %366 = vsyncpa [#allocation4 + $0x1], 1 }

</bundles_post_ra>
